<compile_context>
chip_gen: v7x
topology: tpu7x:2x2x1
jax: 0.10.0
libtpu: 0.0.40
codegen_flags: <defaults>
</compile_context>

<pallas_src>
import jax
import jax.numpy as jnp
from jax.experimental import pallas as pl
from jax.experimental.pallas import tpu as pltpu


def _state_stack_kernel(pos_ref, op_ref,           # scalar prefetch (SMEM, (B,) i32)
                        inp_hbm, stack_in_hbm,     # inputs : (B,H) HBM, (S2,B,H) HBM
                        stack_out_hbm, ret_hbm,    # outputs: (S2,B,H) HBM (aliased), (B,H) HBM
                        sems):                     # scratch: (2,B) DMA semaphores
    s2 = stack_in_hbm.shape[0]
    batch = inp_hbm.shape[0]

    # ---- Phase 1: issue every row DMA so they are all in flight at once. ----
    @pl.loop(0, batch)
    def _issue(b):
        p = pos_ref[b]
        o = op_ref[b]
        # Clamp so the row DMAs never go out of bounds.
        w_row = jnp.clip(p + 1, 0, s2 - 1)
        r_row = jnp.clip(p + o, 0, s2 - 1)

        # scatter: hidden_stack[pos+1, b, :] = input[b, :]  (in-place HBM row write)
        pltpu.make_async_copy(inp_hbm.at[b],
                              stack_out_hbm.at[w_row, b],
                              sems.at[0, b]).start()

        # gather: ret[b, :] = hidden_stack[pos+op, b, :]
        #   op == 1 -> the gathered row is exactly the row being written above:
        #              copy the input directly (no HBM round trip, no race).
        #   op != 1 -> read the (untouched) old row; it targets a different
        #              depth row, so there is no hazard with the write DMA.
        @pl.when(o == 1)
        def _():
            pltpu.make_async_copy(inp_hbm.at[b], ret_hbm.at[b],
                                  sems.at[1, b]).start()

        @pl.when(o != 1)
        def _():
            pltpu.make_async_copy(stack_in_hbm.at[r_row, b], ret_hbm.at[b],
                                  sems.at[1, b]).start()

    # ---- Phase 2: drain.  Waiting only needs a descriptor of matching size,
    # so fixed row indices are fine here (standard reconstructed-wait pattern).
    @pl.loop(0, batch)
    def _drain(b):
        pltpu.make_async_copy(inp_hbm.at[0], stack_out_hbm.at[0, 0],
                              sems.at[0, b]).wait()
        pltpu.make_async_copy(inp_hbm.at[0], ret_hbm.at[0],
                              sems.at[1, b]).wait()


def _state_stack_forward(hidden_stack, pos, inp, op):
    """One StateStack.forward step.

    hidden_stack: (seq_len+2, batch, hidden)   (updated in place via aliasing)
    pos:          (batch,) int32
    inp:          (batch, hidden)
    op:           (batch,) int32   (-1 pop, 0 hold, 1 push)

    Returns (new_hidden_stack, new_pos, hidden_ret).
    """
    S2, B, H = hidden_stack.shape
    dtype = hidden_stack.dtype
    pos = pos.astype(jnp.int32)
    op = op.astype(jnp.int32)
    inp = inp.astype(dtype)

    new_stack, ret = pl.pallas_call(
        _state_stack_kernel,
        out_shape=(
            jax.ShapeDtypeStruct((S2, B, H), dtype),   # updated stack (aliased, in place)
            jax.ShapeDtypeStruct((B, H), dtype),       # hidden_ret
        ),
        grid_spec=pltpu.PrefetchScalarGridSpec(
            num_scalar_prefetch=2,                     # pos, op -> SMEM
            grid=(1,),                                 # single invocation
            in_specs=[
                pl.BlockSpec(memory_space=pl.ANY),     # input rows stay in HBM
                pl.BlockSpec(memory_space=pl.ANY),     # stack stays in HBM
            ],
            out_specs=(
                pl.BlockSpec(memory_space=pl.ANY),     # stack: in-place alias
                pl.BlockSpec(memory_space=pl.ANY),     # ret: written row-by-row
            ),
            scratch_shapes=[pltpu.SemaphoreType.DMA((2, B))],
        ),
        # call args are (pos, op, inp, hidden_stack) -> hidden_stack (index 3)
        # aliases output 0 (the updated stack).
        input_output_aliases={3: 0},
        compiler_params=pltpu.CompilerParams(
            dimension_semantics=("arbitrary",),
        ),
    )(pos, op, inp, hidden_stack)

    new_pos = pos + op        # cheap scalar update, kept outside the kernel
    return new_stack, new_pos, ret


# Donate the stack buffer so input_output_aliases really updates it in place
# (no full-stack HBM round trip, no defensive copy).
state_stack_forward = jax.jit(_state_stack_forward, donate_argnums=(0,))


class StateStack:
    """JAX/Pallas port of the PyTorch StateStack (forward path)."""

    def __init__(self, hidden_size, key, init_var=None):
        self.hidden_size = hidden_size
        if init_var is None:
            # deterministic stand-in for torch.rand((hidden_size,))
            self.initial_hidden = jax.random.uniform(key, (hidden_size,),
                                                     dtype=jnp.float32)
        else:
            self.initial_hidden = init_var

    def build_stack(self, batch_size, seq_len, hiddens=None, hidden_masks=None):
        self.batch_size = batch_size
        self.seq_len = seq_len
        stack = jnp.zeros((seq_len + 2, batch_size, self.hidden_size),
                          dtype=jnp.float32)
        stack = stack.at[0, :, :].set(
            jnp.broadcast_to(self.initial_hidden,
                             (batch_size, self.hidden_size)))
        if hiddens is not None:
            stack = stack.at[1:seq_len + 1, :, :].set(hiddens.astype(stack.dtype))
        self.hidden_stack = stack
        if hidden_masks is not None:
            self.pos = jnp.sum(hidden_masks, axis=0).astype(jnp.int32)
        else:
            self.pos = jnp.zeros((batch_size,), dtype=jnp.int32)

    def forward(self, inp, op):
        new_stack, new_pos, ret = state_stack_forward(
            self.hidden_stack, self.pos, inp, op)
        self.hidden_stack = new_stack
        self.pos = new_pos
        return ret

    def head(self):
        b_idx = jnp.arange(self.batch_size)
        return self.hidden_stack[self.pos, b_idx, :]

    def size(self):
        return jnp.min(self.pos + 1)


def _reference_forward(stack, pos, inp, op):
    # pure-JAX reference mirroring the PyTorch forward
    S2, B, H = stack.shape
    b_idx = jnp.arange(B)
    stack = stack.at[pos + 1, b_idx, :].set(inp)
    new_pos = pos + op
    ret = stack[new_pos, b_idx, :]
    return stack, new_pos, ret


if __name__ == "__main__":
    key = jax.random.PRNGKey(0)
    k_init, k_hid, k_in1, k_in2 = jax.random.split(key, 4)

    # Small shapes; hidden is lane-dense (multiple of 128).
    batch_size, seq_len, hidden_size = 2, 8, 128

    module = StateStack(hidden_size, k_init)
    hiddens = jax.random.normal(k_hid, (seq_len, batch_size, hidden_size),
                                dtype=jnp.float32)
    module.build_stack(batch_size, seq_len, hiddens=hiddens)
    module.pos = jnp.array([3, 5], dtype=jnp.int32)   # non-trivial stack pointers

    # --- step 1: push (b=0) / pop (b=1) ---
    inp1 = jax.random.normal(k_in1, (batch_size, hidden_size), dtype=jnp.float32)
    op1 = jnp.array([1, -1], dtype=jnp.int32)
    ref_stack1, ref_pos1, ref_ret1 = _reference_forward(
        module.hidden_stack, module.pos, inp1, op1)
    jax.block_until_ready(ref_stack1)

    ret1 = module.forward(inp1, op1)
    jax.block_until_ready(ret1)

    assert ret1.shape == (batch_size, hidden_size)
    assert jnp.allclose(ret1, ref_ret1, atol=1e-6)
    assert jnp.array_equal(module.pos, ref_pos1)
    assert jnp.allclose(module.hidden_stack, ref_stack1, atol=1e-6)

    # --- step 2: hold (b=0) / push (b=1) ---
    inp2 = jax.random.normal(k_in2, (batch_size, hidden_size), dtype=jnp.float32)
    op2 = jnp.array([0, 1], dtype=jnp.int32)
    ref_stack2, ref_pos2, ref_ret2 = _reference_forward(
        ref_stack1, ref_pos1, inp2, op2)
    jax.block_until_ready(ref_stack2)

    ret2 = module.forward(inp2, op2)
    jax.block_until_ready(ret2)

    assert jnp.allclose(ret2, ref_ret2, atol=1e-6)
    assert jnp.array_equal(module.pos, ref_pos2)
    assert jnp.allclose(module.hidden_stack, ref_stack2, atol=1e-6)

    print("KERNEL_OK")
</pallas_src>

<mosaic_0001>
module attributes {stable_mosaic.version = 11 : i64} {
  func.func @_state_stack_kernel(%arg0: i32, %arg1: memref<2xi32, #tpu.memory_space<smem>>, %arg2: memref<2xi32, #tpu.memory_space<smem>>, %arg3: memref<2x128xf32, #tpu.memory_space<any>>, %arg4: memref<10x2x128xf32, #tpu.memory_space<any>>, %arg5: memref<10x2x128xf32, #tpu.memory_space<any>>, %arg6: memref<2x128xf32, #tpu.memory_space<any>>, %arg7: memref<2x2x!tpu.dma_semaphore, #tpu.memory_space<semaphore_mem>>) attributes {dimension_semantics = [#tpu.dimension_semantics<arbitrary>], iteration_bounds = array<i64: 1>, scalar_prefetch = 2 : i64, scratch_operands = 1 : i64, tpu.core_type = #tpu.core_type<tc>, window_params = [{}, {}, {}, {}]} {
    %c0_i32 = arith.constant 0 : i32
    %c2_i32 = arith.constant 2 : i32
    %0 = arith.addi %c0_i32, %c2_i32 : i32
    %c1_i32 = arith.constant 1 : i32
    scf.for %arg8 = %c0_i32 to %0 step %c1_i32  : i32 {
      %c1_i32_5 = arith.constant 1 : i32
      %2 = arith.muli %arg8, %c1_i32_5 : i32
      %c0_i32_6 = arith.constant 0 : i32
      %3 = arith.addi %c0_i32_6, %2 : i32
      %4 = arith.index_cast %3 : i32 to index
      %5 = memref.load %arg1[%4] : memref<2xi32, #tpu.memory_space<smem>>
      %6 = arith.index_cast %3 : i32 to index
      %7 = memref.load %arg2[%6] : memref<2xi32, #tpu.memory_space<smem>>
      %c1_i32_7 = arith.constant 1 : i32
      %8 = arith.addi %5, %c1_i32_7 : i32
      %c0_i32_8 = arith.constant 0 : i32
      %c9_i32 = arith.constant 9 : i32
      %9 = arith.maxsi %c0_i32_8, %8 : i32
      %10 = arith.minsi %c9_i32, %9 : i32
      %11 = arith.addi %5, %7 : i32
      %c0_i32_9 = arith.constant 0 : i32
      %c9_i32_10 = arith.constant 9 : i32
      %12 = arith.maxsi %c0_i32_9, %11 : i32
      %13 = arith.minsi %c9_i32_10, %12 : i32
      %c0_i32_11 = arith.constant 0 : i32
      %c0_i32_12 = arith.constant 0 : i32
      %14 = tpu.memref_slice %arg3[%3, %c0_i32_12] : memref<2x128xf32, #tpu.memory_space<any>> -> memref<1x128xf32, #tpu.memory_space<any>>
      %15 = tpu.memref_squeeze %14 : memref<1x128xf32, #tpu.memory_space<any>> -> memref<128xf32, #tpu.memory_space<any>>
      %c0_i32_13 = arith.constant 0 : i32
      %16 = tpu.memref_slice %arg5[%10, %3, %c0_i32_13] : memref<10x2x128xf32, #tpu.memory_space<any>> -> memref<1x1x128xf32, #tpu.memory_space<any>>
      %17 = tpu.memref_squeeze %16 : memref<1x1x128xf32, #tpu.memory_space<any>> -> memref<128xf32, #tpu.memory_space<any>>
      %18 = tpu.memref_slice %arg7[%c0_i32_11, %3] : memref<2x2x!tpu.dma_semaphore, #tpu.memory_space<semaphore_mem>> -> memref<1x1x!tpu.dma_semaphore, #tpu.memory_space<semaphore_mem>>
      %19 = tpu.memref_squeeze %18 : memref<1x1x!tpu.dma_semaphore, #tpu.memory_space<semaphore_mem>> -> memref<!tpu.dma_semaphore, #tpu.memory_space<semaphore_mem>>
      tpu.enqueue_dma source(%15 : memref<128xf32, #tpu.memory_space<any>>) target(%17 : memref<128xf32, #tpu.memory_space<any>>) target_semaphore(%19 : memref<!tpu.dma_semaphore, #tpu.memory_space<semaphore_mem>>)
      %c1_i32_14 = arith.constant 1 : i32
      %20 = arith.cmpi eq, %7, %c1_i32_14 : i32
      %21 = arith.extui %20 : i1 to i32
      %c0_i32_15 = arith.constant 0 : i32
      %22 = arith.cmpi ne, %21, %c0_i32_15 : i32
      scf.if %22 {
        %c1_i32_18 = arith.constant 1 : i32
        %c0_i32_19 = arith.constant 0 : i32
        %26 = tpu.memref_slice %arg3[%3, %c0_i32_19] : memref<2x128xf32, #tpu.memory_space<any>> -> memref<1x128xf32, #tpu.memory_space<any>>
        %27 = tpu.memref_squeeze %26 : memref<1x128xf32, #tpu.memory_space<any>> -> memref<128xf32, #tpu.memory_space<any>>
        %c0_i32_20 = arith.constant 0 : i32
        %28 = tpu.memref_slice %arg6[%3, %c0_i32_20] : memref<2x128xf32, #tpu.memory_space<any>> -> memref<1x128xf32, #tpu.memory_space<any>>
        %29 = tpu.memref_squeeze %28 : memref<1x128xf32, #tpu.memory_space<any>> -> memref<128xf32, #tpu.memory_space<any>>
        %30 = tpu.memref_slice %arg7[%c1_i32_18, %3] : memref<2x2x!tpu.dma_semaphore, #tpu.memory_space<semaphore_mem>> -> memref<1x1x!tpu.dma_semaphore, #tpu.memory_space<semaphore_mem>>
        %31 = tpu.memref_squeeze %30 : memref<1x1x!tpu.dma_semaphore, #tpu.memory_space<semaphore_mem>> -> memref<!tpu.dma_semaphore, #tpu.memory_space<semaphore_mem>>
        tpu.enqueue_dma source(%27 : memref<128xf32, #tpu.memory_space<any>>) target(%29 : memref<128xf32, #tpu.memory_space<any>>) target_semaphore(%31 : memref<!tpu.dma_semaphore, #tpu.memory_space<semaphore_mem>>)
      } else {
      }
      %c1_i32_16 = arith.constant 1 : i32
      %23 = arith.cmpi ne, %7, %c1_i32_16 : i32
      %24 = arith.extui %23 : i1 to i32
      %c0_i32_17 = arith.constant 0 : i32
      %25 = arith.cmpi ne, %24, %c0_i32_17 : i32
      scf.if %25 {
        %c1_i32_18 = arith.constant 1 : i32
        %c0_i32_19 = arith.constant 0 : i32
        %26 = tpu.memref_slice %arg4[%13, %3, %c0_i32_19] : memref<10x2x128xf32, #tpu.memory_space<any>> -> memref<1x1x128xf32, #tpu.memory_space<any>>
        %27 = tpu.memref_squeeze %26 : memref<1x1x128xf32, #tpu.memory_space<any>> -> memref<128xf32, #tpu.memory_space<any>>
        %c0_i32_20 = arith.constant 0 : i32
        %28 = tpu.memref_slice %arg6[%3, %c0_i32_20] : memref<2x128xf32, #tpu.memory_space<any>> -> memref<1x128xf32, #tpu.memory_space<any>>
        %29 = tpu.memref_squeeze %28 : memref<1x128xf32, #tpu.memory_space<any>> -> memref<128xf32, #tpu.memory_space<any>>
        %30 = tpu.memref_slice %arg7[%c1_i32_18, %3] : memref<2x2x!tpu.dma_semaphore, #tpu.memory_space<semaphore_mem>> -> memref<1x1x!tpu.dma_semaphore, #tpu.memory_space<semaphore_mem>>
        %31 = tpu.memref_squeeze %30 : memref<1x1x!tpu.dma_semaphore, #tpu.memory_space<semaphore_mem>> -> memref<!tpu.dma_semaphore, #tpu.memory_space<semaphore_mem>>
        tpu.enqueue_dma source(%27 : memref<128xf32, #tpu.memory_space<any>>) target(%29 : memref<128xf32, #tpu.memory_space<any>>) target_semaphore(%31 : memref<!tpu.dma_semaphore, #tpu.memory_space<semaphore_mem>>)
      } else {
      }
    }
    %c2_i32_0 = arith.constant 2 : i32
    %c0_i32_1 = arith.constant 0 : i32
    %c2_i32_2 = arith.constant 2 : i32
    %1 = arith.addi %c0_i32_1, %c2_i32_2 : i32
    %c1_i32_3 = arith.constant 1 : i32
    scf.for %arg8 = %c0_i32_1 to %1 step %c1_i32_3  : i32 {
      %c1_i32_5 = arith.constant 1 : i32
      %2 = arith.muli %arg8, %c1_i32_5 : i32
      %c0_i32_6 = arith.constant 0 : i32
      %3 = arith.addi %c0_i32_6, %2 : i32
      %c0_i32_7 = arith.constant 0 : i32
      %c0_i32_8 = arith.constant 0 : i32
      %c0_i32_9 = arith.constant 0 : i32
      %c0_i32_10 = arith.constant 0 : i32
      %c0_i32_11 = arith.constant 0 : i32
      %4 = tpu.memref_slice %arg3[%c0_i32_7, %c0_i32_11] : memref<2x128xf32, #tpu.memory_space<any>> -> memref<1x128xf32, #tpu.memory_space<any>>
      %5 = tpu.memref_squeeze %4 : memref<1x128xf32, #tpu.memory_space<any>> -> memref<128xf32, #tpu.memory_space<any>>
      %c0_i32_12 = arith.constant 0 : i32
      %6 = tpu.memref_slice %arg5[%c0_i32_8, %c0_i32_9, %c0_i32_12] : memref<10x2x128xf32, #tpu.memory_space<any>> -> memref<1x1x128xf32, #tpu.memory_space<any>>
      %7 = tpu.memref_squeeze %6 : memref<1x1x128xf32, #tpu.memory_space<any>> -> memref<128xf32, #tpu.memory_space<any>>
      %8 = tpu.memref_slice %arg7[%c0_i32_10, %3] : memref<2x2x!tpu.dma_semaphore, #tpu.memory_space<semaphore_mem>> -> memref<1x1x!tpu.dma_semaphore, #tpu.memory_space<semaphore_mem>>
      %9 = tpu.memref_squeeze %8 : memref<1x1x!tpu.dma_semaphore, #tpu.memory_space<semaphore_mem>> -> memref<!tpu.dma_semaphore, #tpu.memory_space<semaphore_mem>>
      tpu.wait_dma2 semaphore(%9 : memref<!tpu.dma_semaphore, #tpu.memory_space<semaphore_mem>>) src(%5 : memref<128xf32, #tpu.memory_space<any>>) dst(%7 : memref<128xf32, #tpu.memory_space<any>>)
      %c0_i32_13 = arith.constant 0 : i32
      %c0_i32_14 = arith.constant 0 : i32
      %c1_i32_15 = arith.constant 1 : i32
      %c0_i32_16 = arith.constant 0 : i32
      %10 = tpu.memref_slice %arg3[%c0_i32_13, %c0_i32_16] : memref<2x128xf32, #tpu.memory_space<any>> -> memref<1x128xf32, #tpu.memory_space<any>>
      %11 = tpu.memref_squeeze %10 : memref<1x128xf32, #tpu.memory_space<any>> -> memref<128xf32, #tpu.memory_space<any>>
      %c0_i32_17 = arith.constant 0 : i32
      %12 = tpu.memref_slice %arg6[%c0_i32_14, %c0_i32_17] : memref<2x128xf32, #tpu.memory_space<any>> -> memref<1x128xf32, #tpu.memory_space<any>>
      %13 = tpu.memref_squeeze %12 : memref<1x128xf32, #tpu.memory_space<any>> -> memref<128xf32, #tpu.memory_space<any>>
      %14 = tpu.memref_slice %arg7[%c1_i32_15, %3] : memref<2x2x!tpu.dma_semaphore, #tpu.memory_space<semaphore_mem>> -> memref<1x1x!tpu.dma_semaphore, #tpu.memory_space<semaphore_mem>>
      %15 = tpu.memref_squeeze %14 : memref<1x1x!tpu.dma_semaphore, #tpu.memory_space<semaphore_mem>> -> memref<!tpu.dma_semaphore, #tpu.memory_space<semaphore_mem>>
      tpu.wait_dma2 semaphore(%15 : memref<!tpu.dma_semaphore, #tpu.memory_space<semaphore_mem>>) src(%11 : memref<128xf32, #tpu.memory_space<any>>) dst(%13 : memref<128xf32, #tpu.memory_space<any>>)
    }
    %c2_i32_4 = arith.constant 2 : i32
    return
  }
}

</mosaic_0001>

<bundles_post_ra>
// kernel: _state_stack_forward.1
= control target key start
LH: loop header
LB: loop body
LE: loop exit
PB: predicated region body
PF: predicated region fallthrough
CT: control target
= control target key end

     0   :  { %s468_s0 = inlined_call_operand.hbm [shape: s32[2], index: 0, kind: input, shape index: {}]   ;;  %s469_s2 = inlined_call_operand.vmem [shape: f32[2,128], index: 2, kind: input, shape index: {}]   ;;  %s470_s3 = inlined_call_operand.hbm [shape: f32[10,2,128], index: 3, kind: input, shape index: {}, may-alias: {3,4}]   ;;  %s471_s4 = inlined_call_operand.hbm [shape: f32[10,2,128], index: 4, kind: output, shape index: {0}, may-alias: {3,4}]   ;;  %s472_s5 = inlined_call_operand.hbm [shape: f32[2,128], index: 5, kind: output, shape index: {1}]   ;;  %s473_s1 = inlined_call_operand.vmem [shape: s32[2], index: 1, kind: input, shape index: {}]  }
   0x1   :  { %s221_s20 = scalar_lea.hbm %s468_s0, 16 }
   0x2   :  { %p222_p0 = scmp.ne.s32.totalorder %s468_s0, %s221_s20  ;;  %p225_p1 = scmp.lt.u32.totalorder %s221_s20, %s468_s0 }
   0x4   :  { %p227_p2 = pnand %p225_p1, %p222_p0 }
   0x6   :  { %230 = shalt.err (!%p227_p2)  }
   0x7   :  { %s317_s25 = smov [#allocation4]   ;;  %s13_s30 = sshll.u32 %s473_s1, 4  ;;  %s14_s30 = int_to_ptr.vmem [resolvable:$true] %s13_s30 }
   0x8   :  { %12 = dma.hbm_to_smem %s468_s0, 16, %s317_s25, [#allocation3] }
   0x9   :  { %s231_s6 = scalar_lea.vmem %s14_s30, 16  ;;  %p236_p4 = scmp.lt.s32.totalorder %s14_s30, %s14_s30 }
   0xa   :  { %p232_p3 = scmp.ne.s32.totalorder %s14_s30, %s231_s6  ;;  %p237_p5 = scmp.lt.s32.totalorder %s231_s6, %s231_s6 }
   0xc   :  { %p238_p6 = por %p237_p5, %p236_p4 }
   0xe   :  { %p239_p7 = pnand %p238_p6, %p232_p3 }
  0x10   :  { %242 = shalt.err (!%p239_p7)  }
  0x11   :  { %s318_s7 = smov [#allocation5]  }
  0x12   :  { %16 = dma.vmem_to_smem %s14_s30, 16, %s318_s7, [#allocation3] }
  0x13   :  { %303 = dma.done.wait [#allocation3], 32 }
  0x14   :  { %304 = vsyncadd [#allocation3], 4294967264 }
  0x15   :  { %18 = sfence }
  0x16   :  { %s366_s8 = smov 0  }
  0x17 LB: > { %s25_s0 = sld [smem:[#allocation4 + %s311_s8]]  ;;  %s37_s11 = scalar_lea.vmem %s469_s2, %s311_s8  ;;  %s311_s8 = sphi %s366_s8, %s24_s8  }
  0x18   : > { %s373_s1 = sld [smem:[#allocation5 + %s311_s8]]  ;;  %s50_s12 = sshll.u32 %s37_s11, 4  ;;  %s384_s12 = int_to_ptr.vmem [resolvable:$true] %s50_s12 }
  0x19   : > { %s42_s14 = scalar_lea.sflag [#allocation2], %s311_s8  ;;  %s182_s17 = sshll.u32 %s311_s8, 4 }
  0x1a   : > { %s382_s15 = scalar_lea.sflag %s42_s14, 2 [#allocation2]  ;;  %s397_s22 = scalar_lea.hbm %s472_s5, %s182_s17 }
  0x1b   : > { %s243_s28 = scalar_lea.vmem %s384_s12, 16  ;;  %s245_s7 = sshll.u32 %s469_s2, 4  ;;  %s246_s7 = int_to_ptr.vmem [resolvable:$false] %s245_s7 }
  0x1c   : > { %p407_p13 = scmp.ne.s32.totalorder %s384_s12, %s243_s28  ;;  %p248_p0 = scmp.lt.s32.totalorder %s384_s12, %s246_s7 }
  0x1d   : > { %s27_s13 = sadd.s32 1, %s25_s0 }
  0x1e   : > { %p28_p8 = scmp.gt.s32.totalorder %s27_s13, 0  ;;  %p169_p9 = scmp.lt.s32.totalorder %s27_s13, 9 }
  0x1f   : > { %s387_s16 = sadd.s32 %s373_s1, %s25_s0  ;;  %p199_p11 = scmp.eq.s32.totalorder %s373_s1, 1 }
  0x20   : > { %s477_s13 = smov (!%p28_p8, %s27_s13), 0  ;;  %p33_p10 = scmp.gt.s32.totalorder %s387_s16, 0 }
  0x21   : > { %s479_s13 = smov (!%p169_p9, %s477_s13), 9  ;;  %p174_p12 = scmp.lt.s32.totalorder %s387_s16, 9 }
  0x22   : > { %s392_s18 = scalar_select %p33_p10, %s387_s16, 0 }
  0x23   : > { %s179_s19 = sshll.u32 %s479_s13, 1  ;;  %s247_s0 = scalar_lea.vmem %s246_s7, 32 }
  0x24   : > { %s39_s23 = sadd.s32 %s311_s8, %s179_s19  ;;  %p249_p1 = scmp.lt.s32.totalorder %s247_s0, %s243_s28 }
  0x25   : > { %s180_s24 = sshll.u32 %s39_s23, 4 }
  0x26   : > { %s41_s27 = scalar_lea.hbm %s471_s4, %s180_s24  ;;  %p415_p2 = por %p249_p1, %p248_p0 }
  0x28   : > { %p251_p3 = pnand %p415_p2, %p407_p13 }
  0x2a   : > { %254 = shalt.err (!%p251_p3)  }
  0x2b   : > { %s255_s10 = scalar_lea.hbm %s41_s27, 16  ;;  %s257_s17 = scalar_lea.hbm %s471_s4, 320 }
  0x2c   : > { %p256_p4 = scmp.ne.s32.totalorder %s41_s27, %s255_s10  ;;  %p258_p5 = scmp.lt.u32.totalorder %s41_s27, %s471_s4 }
  0x2d   : > { %p259_p6 = scmp.lt.u32.totalorder %s257_s17, %s255_s10  ;;  %p261_p8 = scmp.lt.u32.totalorder %s255_s10, %s41_s27 }
  0x2f   : > { %p260_p7 = por %p259_p6, %p258_p5 }
  0x31   : > { %p262_p9 = por %p261_p8, %p260_p7 }
  0x33   : > { %p263_p10 = pnand %p262_p9, %p256_p4 }
  0x35   : > { %266 = shalt.err (!%p263_p10)  }
  0x36   : > { %53 = dma.vmem_to_hbm [thread:$0]  %s384_s12, 16, %s41_s27, %s42_s14 }
  0x37   : > { %p269_p0 = pnand %p407_p13, %p199_p11 }
  0x39   : > { %p270_p1 = pneg %p269_p0 }
  0x3b   : > { %p277_p3 = pnand %p270_p1, %p415_p2 }
  0x3d   : > { %280 = shalt.err (!%p277_p3)  }
  0x3e   : > { %s281_s21 = scalar_lea.hbm %s397_s22, 16  ;;  %s285_s14 = scalar_lea.hbm %s472_s5, 32 }
  0x3f   : > { %p282_p4 = scmp.ne.s32.totalorder %s397_s22, %s281_s21  ;;  %p286_p13 = scmp.lt.u32.totalorder %s397_s22, %s472_s5 }
  0x40   : > { %p287_p2 = scmp.lt.u32.totalorder %s285_s14, %s281_s21  ;;  %p289_p8 = scmp.lt.u32.totalorder %s281_s21, %s397_s22 }
  0x41   : > { %p283_p5 = pnand %p282_p4, %p199_p11 }
  0x42   : > { %p288_p7 = por %p287_p2, %p286_p13 }
  0x43   : > { %p284_p6 = pneg %p283_p5 }
  0x44   : > { %p290_p9 = por %p289_p8, %p288_p7 }
  0x46   : > { %p291_p10 = pnand %p290_p9, %p284_p6 }
  0x48   : > { %294 = shalt.err (!%p291_p10)  }
  0x49   : > { %196 = dma.vmem_to_hbm [thread:$0]  (%p199_p11), %s384_s12, 16, %s397_s22, %s382_s15 }
  0x4a   : > { %s481_s18 = smov (!%p174_p12, %s392_s18), 9  ;;  %p181_p0 = scmp.ne.s32.totalorder %s373_s1, 1 }
  0x4b   : > { %s184_s27 = sshll.u32 %s481_s18, 1  ;;  %s319_s0 = smov [#allocation12]  }
  0x4c   : > { %s78_s28 = sadd.s32 %s311_s8, %s184_s27  ;;  %s320_s9 = smov 0  }
  0x4d   : > { %s185_s29 = sshll.u32 %s78_s28, 4  ;;  %s24_s8 = sadd.s32 1, %s311_s8  }
  0x4e   : > { %s80_s7 = scalar_lea.hbm %s470_s3, %s185_s29  ;;  %p21_p1 = scmp.ge.s32.totalorder %s24_s8, 2  }
  0x4f   : > { %198 = dma.general (%p181_p0), %s80_s7, 16, %s397_s22, %s382_s15, %s319_s0, [#allocation13], %s320_s9, 0  }
  0x50   :  { %23 = sbr.rel (!%p21_p1) target bundleno = 23 (0x17), region = 55  ;;  %s313_s12 = smov (%p21_p1), 0  }
  0x57 LB: > { %s104_s1 = scalar_lea.sflag [#allocation2], %s315_s12  ;;  %s315_s12 = sphi %s313_s12, %s103_s12  }
  0x58   : > { %305 = dma.done.wait %s104_s1, 16 }
  0x59   : > { %306 = vsyncadd %s104_s1, 4294967280  ;;  %s158_s16 = scalar_lea.sflag %s104_s1, 2 [#allocation2] }
  0x5a   : > { %307 = dma.done.wait %s158_s16, 16 }
  0x5b   : > { %308 = vsyncadd %s158_s16, 4294967280  ;;  %s103_s12 = sadd.s32 1, %s315_s12  }
  0x5c   : > { %p100_p11 = scmp.ge.s32.totalorder %s103_s12, 2  }
  0x5e   :  { %102 = sbr.rel (!%p100_p11) target bundleno = 87 (0x57), region = 66 }
  0x65   :  { %111 = vsyncmov [#allocation2] }
  0x68   :  { %s112_s15 = vpop.sfrf %111 }
  0x69   :  { %p187_p12 = scmp.ne.s32.totalorder %s112_s15, 0 }
  0x6b   :  { %116 = shalt.err (%p187_p12)  }
  0x6c   :  { %118 = vsyncmov [#allocation2 + $0x1] }
  0x6f   :  { %s119_s8 = vpop.sfrf %118 }
  0x70   :  { %p188_p3 = scmp.ne.s32.totalorder %s119_s8, 0 }
  0x72   :  { %123 = shalt.err (%p188_p3)  }
  0x73   :  { %125 = vsyncmov [#allocation2 + $0x2] }
  0x76   :  { %s126_s2 = vpop.sfrf %125 }
  0x77   :  { %p189_p4 = scmp.ne.s32.totalorder %s126_s2, 0 }
  0x79   :  { %130 = shalt.err (%p189_p4)  }
  0x7a   :  { %132 = vsyncmov [#allocation2 + $0x3] }
  0x7d   :  { %s133_s3 = vpop.sfrf %132 }
  0x7e   :  { %p190_p5 = scmp.ne.s32.totalorder %s133_s3, 0 }
  0x80   :  { %137 = shalt.err (%p190_p5)  }

</bundles_post_ra>
